<compile_context>
chip_gen: v5e
topology: v5e:2x2
jax: 0.10.0
libtpu: 0.0.40
codegen_flags: <defaults>
</compile_context>

<pallas_src>
import functools

import jax
import jax.numpy as jnp
from jax.experimental import pallas as pl
from jax.experimental.pallas import tpu as pltpu


def _gemm_bias_relu_kernel(x_ref, w_ref, b_ref, o_ref, *, has_affine, has_relu):
    """(Cout, K) x (K, TP) matmul tile with fused bias + ReLU epilogue.

    x_ref: (1, K, TP)    bf16 im2col patches (lane-dense spatial tile)
    w_ref: (Cout, K)     bf16 weights with the BN scale pre-folded in
    b_ref: (Cout, 1)     f32 folded BN / conv bias
    o_ref: (1, Cout, TP) output tile (x dtype)
    """
    acc = jnp.dot(w_ref[...], x_ref[0], preferred_element_type=jnp.float32)
    if has_affine:
        acc = acc + b_ref[...]            # (Cout, 1) broadcast over lanes
    if has_relu:
        acc = jnp.maximum(acc, 0.0)
    o_ref[0] = acc.astype(o_ref.dtype)


def _ceil_div(a, b):
    return -(-a // b)


def _pick_spatial_tile(p, n_batch, k, cout, *, in_bytes=2, out_bytes=4,
                       max_tile=8192, vmem_budget=8 * 1024 * 1024):
    """Pick a lane-dense spatial tile TP, grid count G and padded extent G*TP."""
    # Double-buffered input + output block bytes per lane column.
    per_lane = 2 * k * in_bytes + 2 * cout * out_bytes
    cap = min(max_tile, max(128, (vmem_budget // per_lane) // 128 * 128))
    g = _ceil_div(p, cap)
    if n_batch == 1 and g == 1 and p > 128:
        g = 2                              # keep both v7x TensorCores busy
    tp = _ceil_div(_ceil_div(p, g), 128) * 128
    return tp, g, g * tp


def conv_bn_relu(x_nchw, weight_oihw, gamma=None, beta=None,
                 running_mean=None, running_var=None, conv_bias=None, *,
                 stride=1, pad=1, dilation=1, eps=1e-5,
                 has_bn=True, has_relu=True, matmul_dtype=jnp.bfloat16):
    """Fused Conv2d + BatchNorm2d(inference) + ReLU.

    x_nchw: (N, Cin, H, W), weight_oihw: (Cout, Cin, KH, KW).
    Returns (N, Cout, OH, OW) in x's dtype.  Pass matmul_dtype=jnp.float32 for
    full-precision matmul operands (several MXU passes, slower).
    """
    N, Cin, H, W = x_nchw.shape
    Cout, Cin_w, KH, KW = weight_oihw.shape
    assert Cin_w == Cin, "grouped conv (groups > 1) not supported"
    if has_bn:
        assert gamma is not None and beta is not None, "BN params required"
        assert running_mean is not None and running_var is not None, \
            "BN running stats required (inference-mode BN)"

    OH = (H + 2 * pad - dilation * (KH - 1) - 1) // stride + 1
    OW = (W + 2 * pad - dilation * (KW - 1) - 1) // stride + 1
    P = OH * OW
    K = KH * KW * Cin

    # --- Fold inference BN (+ optional conv bias) into the weights / a bias ---
    w_f32 = weight_oihw.astype(jnp.float32)
    if has_bn:
        scale = (gamma.astype(jnp.float32)
                 / jnp.sqrt(running_var.astype(jnp.float32) + eps))
        bias = beta.astype(jnp.float32) - running_mean.astype(jnp.float32) * scale
        if conv_bias is not None:
            bias = bias + conv_bias.astype(jnp.float32) * scale
        w_f32 = w_f32 * scale[:, None, None, None]     # scale folded into weights
    else:
        bias = (conv_bias.astype(jnp.float32) if conv_bias is not None
                else jnp.zeros((Cout,), jnp.float32))
    has_affine = has_bn or (conv_bias is not None)
    bias2d = bias.reshape(Cout, 1)

    # Matmul LHS: (Cout, K) with k = (kh*KW + kw)*Cin + ci; cast to matmul dtype
    # only AFTER the f32 scale fold.
    w_lhs = jnp.transpose(w_f32, (0, 2, 3, 1)).reshape(Cout, K).astype(matmul_dtype)

    # --- Wrapper-side im2col in the matmul dtype -----------------------------
    # One (strided) slice per tap; stride/dilation and zero padding all handled
    # here so the kernel never sees lane-offset or strided slices.
    x_pad = jnp.pad(x_nchw, ((0, 0), (0, 0), (pad, pad), (pad, pad)))
    x_pad = x_pad.astype(matmul_dtype)
    taps = []
    for kh in range(KH):
        for kw in range(KW):
            h0, w0 = kh * dilation, kw * dilation
            sl = x_pad[:, :,
                       h0:h0 + (OH - 1) * stride + 1:stride,
                       w0:w0 + (OW - 1) * stride + 1:stride]   # (N, Cin, OH, OW)
            taps.append(sl)
    x_taps = jnp.stack(taps, axis=1).reshape(N, K, P)          # free trailing reshape

    TP, G, Ppad = _pick_spatial_tile(
        P, N, K, Cout,
        in_bytes=jnp.dtype(matmul_dtype).itemsize,
        out_bytes=jnp.dtype(x_nchw.dtype).itemsize)
    if Ppad != P:   # guarantee a lane-dense (multiple-of-128) output block
        x_taps = jnp.pad(x_taps, ((0, 0), (0, 0), (0, Ppad - P)))

    kernel = functools.partial(_gemm_bias_relu_kernel,
                               has_affine=has_affine, has_relu=has_relu)

    out_flat = pl.pallas_call(
        kernel,
        out_shape=jax.ShapeDtypeStruct((N, Cout, Ppad), x_nchw.dtype),
        grid=(N, G),
        in_specs=[
            # disjoint lane-dense patch tiles per grid cell
            pl.BlockSpec((1, K, TP), lambda n, g: (n, 0, g)),
            # weights / bias VMEM-resident (constant index maps)
            pl.BlockSpec((Cout, K), lambda n, g: (0, 0)),
            pl.BlockSpec((Cout, 1), lambda n, g: (0, 0)),
        ],
        out_specs=pl.BlockSpec((1, Cout, TP), lambda n, g: (n, 0, g)),
        compiler_params=pltpu.CompilerParams(
            dimension_semantics=("parallel", "parallel")),
    )(x_taps, w_lhs, bias2d)

    if Ppad != P:
        out_flat = out_flat[:, :, :P]
    return out_flat.reshape(N, Cout, OH, OW)


def _reference(x_nchw, weight_oihw, gamma, beta, running_mean, running_var,
               *, stride, pad, dilation, eps=1e-5):
    """Plain-JAX reference (inference-mode BN + ReLU) for validation."""
    y = jax.lax.conv_general_dilated(
        x_nchw, weight_oihw,
        window_strides=(stride, stride),
        padding=((pad, pad), (pad, pad)),
        rhs_dilation=(dilation, dilation),
        dimension_numbers=("NCHW", "OIHW", "NCHW"))
    scale = gamma / jnp.sqrt(running_var + eps)
    bias = beta - running_mean * scale
    y = y * scale[None, :, None, None] + bias[None, :, None, None]
    return jnp.maximum(y, 0.0)


if __name__ == "__main__":
    # ConvBnRelu(in_planes=4, out_planes=8, ksize=3, stride=1, pad=1)
    N, Cin, H, W = 2, 4, 16, 16
    Cout, KH, KW = 8, 3, 3
    stride, pad, dilation = 1, 1, 1

    key = jax.random.PRNGKey(0)
    kx, kw_, kg, kb, km, kv = jax.random.split(key, 6)

    x = jax.random.normal(kx, (N, Cin, H, W), jnp.float32)
    weight = jax.random.normal(kw_, (Cout, Cin, KH, KW), jnp.float32) * 0.1
    gamma = 1.0 + 0.1 * jax.random.normal(kg, (Cout,), jnp.float32)
    beta = 0.1 * jax.random.normal(kb, (Cout,), jnp.float32)
    running_mean = 0.1 * jax.random.normal(km, (Cout,), jnp.float32)
    running_var = jnp.abs(jax.random.normal(kv, (Cout,), jnp.float32)) + 0.5

    fused = jax.jit(functools.partial(conv_bn_relu, stride=stride, pad=pad,
                                      dilation=dilation))
    out = fused(x, weight, gamma, beta, running_mean, running_var)
    out = jax.block_until_ready(out)

    ref = _reference(x, weight, gamma, beta, running_mean, running_var,
                     stride=stride, pad=pad, dilation=dilation)
    assert out.shape == ref.shape, (out.shape, ref.shape)
    # bf16 MXU operands with f32 accumulation -> compare with bf16 tolerance.
    assert jnp.allclose(out, ref, rtol=2e-2, atol=2e-2), (
        float(jnp.max(jnp.abs(out - ref))))

    print("KERNEL_OK")
</pallas_src>

<mosaic_0001>
module attributes {stable_mosaic.version = 11 : i64} {
  func.func @_gemm_bias_relu_kernel(%arg0: i32, %arg1: i32, %arg2: memref<1x36x256xbf16, #tpu.memory_space<vmem>>, %arg3: memref<8x36xbf16, #tpu.memory_space<vmem>>, %arg4: memref<8x1xf32, #tpu.memory_space<vmem>>, %arg5: memref<1x8x256xf32, #tpu.memory_space<vmem>>) attributes {dimension_semantics = [#tpu.dimension_semantics<parallel>, #tpu.dimension_semantics<parallel>], iteration_bounds = array<i64: 2, 1>, scalar_prefetch = 0 : i64, scratch_operands = 0 : i64, tpu.core_type = #tpu.core_type<tc>, window_params = [{transform_indices = @transform_0, window_bounds = array<i64: 1, 36, 256>}, {pipeline_mode = #tpu.pipeline_mode<synchronous>, transform_indices = @transform_1, window_bounds = array<i64: 8, 36>}, {pipeline_mode = #tpu.pipeline_mode<synchronous>, transform_indices = @transform_2, window_bounds = array<i64: 8, 1>}, {transform_indices = @transform_3, window_bounds = array<i64: 1, 8, 256>}]} {
    %c0 = arith.constant 0 : index
    %c0_0 = arith.constant 0 : index
    %0 = vector.load %arg3[%c0, %c0_0] : memref<8x36xbf16, #tpu.memory_space<vmem>>, vector<8x36xbf16>
    %c0_1 = arith.constant 0 : index
    %c0_2 = arith.constant 0 : index
    %c0_3 = arith.constant 0 : index
    %1 = vector.load %arg2[%c0_1, %c0_2, %c0_3] : memref<1x36x256xbf16, #tpu.memory_space<vmem>>, vector<1x36x256xbf16>
    %2 = vector.shape_cast %1 : vector<1x36x256xbf16> to vector<36x256xbf16>
    %cst = arith.constant dense<0.000000e+00> : vector<8x256xf32>
    %3 = tpu.matmul %0, %2, %cst {dimension_numbers = #tpu.dot_dimension_numbers<[1], [0], [0], [1], [0, 0, 1, 1], [], []>} : vector<8x36xbf16>, vector<36x256xbf16>, vector<8x256xf32> -> vector<8x256xf32>
    %c0_4 = arith.constant 0 : index
    %c0_5 = arith.constant 0 : index
    %4 = vector.load %arg4[%c0_4, %c0_5] : memref<8x1xf32, #tpu.memory_space<vmem>>, vector<8x1xf32>
    %5 = vector.broadcast %4 : vector<8x1xf32> to vector<8x256xf32>
    %6 = arith.addf %3, %5 : vector<8x256xf32>
    %cst_6 = arith.constant 0.000000e+00 : f32
    %7 = vector.broadcast %cst_6 : f32 to vector<8x256xf32>
    %8 = arith.maximumf %6, %7 : vector<8x256xf32>
    %c0_7 = arith.constant 0 : index
    %c0_8 = arith.constant 0 : index
    %c0_9 = arith.constant 0 : index
    %9 = vector.load %arg5[%c0_7, %c0_8, %c0_9] : memref<1x8x256xf32, #tpu.memory_space<vmem>>, vector<1x8x256xf32>
    %10 = vector.shape_cast %9 : vector<1x8x256xf32> to vector<8x256xf32>
    %11 = vector.shape_cast %8 : vector<8x256xf32> to vector<1x8x256xf32>
    tpu.vector_store %arg5[%c0_7, %c0_8, %c0_9], %11 {strides = array<i32>} : memref<1x8x256xf32, #tpu.memory_space<vmem>>, vector<1x8x256xf32>,
    return
  }
  func.func @transform_0(%arg0: i32, %arg1: i32) -> (i32, i32, i32) {
    %c0_i32 = arith.constant 0 : i32
    %c0_i32_0 = arith.constant 0 : i32
    return %arg0, %c0_i32, %arg1 : i32, i32, i32
  }
  func.func @transform_1(%arg0: i32, %arg1: i32) -> (i32, i32) {
    %c0_i32 = arith.constant 0 : i32
    %c0_i32_0 = arith.constant 0 : i32
    %c0_i32_1 = arith.constant 0 : i32
    return %c0_i32, %c0_i32_0 : i32, i32
  }
  func.func @transform_2(%arg0: i32, %arg1: i32) -> (i32, i32) {
    %c0_i32 = arith.constant 0 : i32
    %c0_i32_0 = arith.constant 0 : i32
    %c0_i32_1 = arith.constant 0 : i32
    return %c0_i32, %c0_i32_0 : i32, i32
  }
  func.func @transform_3(%arg0: i32, %arg1: i32) -> (i32, i32, i32) {
    %c0_i32 = arith.constant 0 : i32
    %c0_i32_0 = arith.constant 0 : i32
    return %arg0, %c0_i32, %arg1 : i32, i32, i32
  }
}

</mosaic_0001>

<bundles_post_ra>
// kernel: conv_bn_relu.1
= control target key start
LH: loop header
LB: loop body
LE: loop exit
PB: predicated region body
PF: predicated region fallthrough
CT: control target
= control target key end

     0   :  { %s481_s12 = smov 0   ;;  %s483_s13 = smov 0   ;;  %s524_s0 = inlined_call_operand.vmem [shape: bf16[2,36,256], index: 0, kind: input, shape index: {}]   ;;  %s525_s1 = inlined_call_operand.vmem [shape: bf16[8,36], index: 1, kind: input, shape index: {}]   ;;  %s526_s2 = inlined_call_operand.vmem [shape: f32[8,1], index: 2, kind: input, shape index: {}]   ;;  %s527_s3 = inlined_call_operand.vmem [shape: f32[2,8,256], index: 3, kind: output, shape index: {}]  }
   0x1   :  { %s485_s14 = smov 0  }
   0x2 LB: > { %s25_s15 = sadd.s32 1, %s454_s13  ;;  %p380_p0 = scmp.ge.s32.totalorder %s458_s14, 1  ;;  %s458_s14 = sphi %s485_s14, %s13_s14   ;;  %s454_s13 = sphi %s483_s13, %s529_s13   ;;  %s450_s12 = sphi %s481_s12, %s528_s12  }
   0x3   : > { %p27_p1 = scmp.ge.s32.totalorder %s25_s15, 2  ;;  %p158_p2 = scmp.lt.s32.totalorder %s458_s14, 3 }
   0x5   : > { %s531_s15 = smov (%p27_p1, %s25_s15), 0  ;;  %p159_p3 = pnand %p380_p0, %p158_p2 }
   0x6   : > { %p191_p4 = scmp.lt.s32.totalorder (!%p159_p3), %s450_s12, 1 }
   0x7   : > { %162 = sbr.rel (%p159_p3) target bundleno = 167 (0xa7), region = 32 }
   0xc   : > { %v460_v0 = vmov 0   ;;  %v217_v1 = vld [vmem:[%s526_s2] sm:$0xff]  ;;  %s533_s12 = smov (!%p191_p4, %s450_s12), 1  ;;  %vm252_vm0 = vcmask 1041408   ;;  %vm248_vm1 = vcmask 293888  }
   0xd   : > { %435 = vset.pattern.permute.xlu0 %v460_v0  ;;  %s409_s18 = smul.u32 40, %s533_s12  ;;  %v211_v21 = vld [vmem:[%s525_s1] sm:$0xf]  ;;  %s404_s24 = sshll.u32 %s533_s12, 4 }
   0xe   : > { %220 = vperm.xlu0 %435, %v217_v1   ;;  %s208_s27 = scalar_lea.vmem %s527_s3, %s404_s24 }
   0xf   : > { %s198_s21 = scalar_lea.vmem %s524_s0, %s409_s18 }
  0x10   : > { %v216_v2 = vld [vmem:[%s198_s21 + $0x20] sm:$0x33]  ;;  %v394_v5 = vld [vmem:[%s198_s21 + $0x10] sm:$0xf]  ;;  %v408_v8 = vld [vmem:[%s198_s21 + $0x14] sm:$0xf0] }
  0x11   : > { %v236_v3 = vunpack.c.l.b16 %v216_v2  ;;  %v237_v4 = vunpack.c.h.b16 %v216_v2  ;;  %v407_v9 = vld [vmem:[%s198_s21 + $0x14] sm:$0xf]  ;;  %v396_v10 = vld [vmem:[%s198_s21 + $0x18] sm:$0xf0]  ;;  %v395_v13 = vor.u32 %v408_v8, %v394_v5  ;;  %v386_v15 = vld [vmem:[%s198_s21] sm:$0xf] }
  0x12   : > { %v399_v14 = vor.u32 %v407_v9, %v396_v10  ;;  %v406_v16 = vld [vmem:[%s198_s21 + $0x4] sm:$0xf0]  ;;  %v405_v17 = vld [vmem:[%s198_s21 + $0x4] sm:$0xf]  ;;  %v388_v18 = vld [vmem:[%s198_s21 + $0x8] sm:$0xf0] }
  0x13   : > { %v242_v6 = vpack.c.b16 %v236_v3, %v236_v3  ;;  %v243_v7 = vpack.c.b16 %v237_v4, %v237_v4  ;;  %v387_v19 = vor.u32 %v406_v16, %v386_v15  ;;  %v391_v20 = vor.u32 %v405_v17, %v388_v18 }
  0x15   : > { %v254_v11 = vsel %vm252_vm0, %v242_v6, 0  ;;  %v257_v12 = vsel %vm252_vm0, %v243_v7, 0 }
  0x16   : > { %264 = vmatpush.bf16.msra.mxu0 %v254_v11  ;;  %277 = vmatpush.bf16.msra.mxu1 %v257_v12 }
  0x1a   : > { %265 = vmatpush.bf16.msra.mxu0 %v395_v13  ;;  %278 = vmatpush.bf16.msra.mxu1 %v399_v14 }
  0x1e   : > { %266 = vmatpush.bf16.msra.mxu0 %v387_v19  ;;  %279 = vmatpush.bf16.msra.mxu1 %v391_v20 }
  0x21   : > { %400 = vmatmul.msk.bf16.vlgmr.msra.gmra.mxu0 %vm248_vm1, %v211_v21  ;;  %401 = vmatmul.msk.bf16.vlgmr.msra.gmra.mxu1 %vm248_vm1, %v211_v21 }
  0x80   : > { %v221_v22 = vpop.permute.xlu0 %220 }
  0x9e   : > { %v268_v23 = vpop.f32.mrf.mxu0  ;;  %v281_v24 = vpop.f32.mrf.mxu1 }
  0x9f   : > { %v269_v25 = vadd.f32 %v268_v23, %v221_v22  ;;  %v282_v26 = vadd.f32 %v281_v24, %v221_v22 }
  0xa1   : > { %v285_v27 = vmax.f32 %v269_v25, 0.0  ;;  %v286_v28 = vmax.f32 %v282_v26, 0.0 }
  0xa3   : > { %287 = vst [vmem:[%s208_s27] sm:$0xff] %v285_v27 }
  0xa4   : > { %288 = vst [vmem:[%s208_s27 + $0x8] sm:$0xff] %v286_v28 }
  0xa6   : > { %v270_v29 = vpop.f32.mrf.mxu0  ;;  %v283_v30 = vpop.f32.mrf.mxu1 }
  0xa7 PF: > { %s13_s14 = sadd.s32 1, %s458_s14   ;;  %s528_s12 = smov %s454_s13 }
  0xa8   : > { %p10_p5 = scmp.ge.s32.totalorder %s13_s14, 4   ;;  %s529_s13 = smov %s531_s15 }
  0xaa   :  { %12 = sbr.rel (!%p10_p5) target bundleno = 2 (0x2), region = 62 }

</bundles_post_ra>
